<compile_context>
chip_gen: v7x
topology: tpu7x:2x2x1
jax: 0.10.0
libtpu: 0.0.40
codegen_flags: <defaults>
</compile_context>

<pallas_src>
import jax
import jax.numpy as jnp
from jax import lax
from jax.experimental import pallas as pl
from jax.experimental.pallas import tpu as pltpu


def _resnet1d_kernel(xim_ref, wa_ref, ba_ref, w2_ref, b2_ref, wfc_ref, bfc_ref,
                     o_ref, h1p_ref):
    L, Bt, K1 = xim_ref.shape              # (L, Bt, 3*Cin), bf16
    M = L * Bt

    xim = xim_ref[...].reshape(M, K1)

    # ---- fused conv1 (k=3, p=1) + downsample (k=1): one (M, 3Cin)@(3Cin, 192)
    y = jnp.dot(xim, wa_ref[...], preferred_element_type=jnp.float32)
    y = y + ba_ref[...]                    # (M, 192) f32; [bd | b1] bias fused
    # lanes [0:128]  = downsample(x) + bd            (lane-tile aligned slice)
    # lanes [128:192] = conv1(x) + b1                (lane-tile aligned slice)
    acc = y[:, :128] + b2_ref[...]         # single accumulator: ds + b2
    h1 = jnp.maximum(y[:, 128:192], 0.0)   # (M, 64) f32, ReLU(conv1)

    # ---- stage ReLU(conv1) into a zero-bordered scratch with L on the
    # leading (untiled) axis -> every shifted tap slice is an aligned view.
    h1p_ref[0] = jnp.zeros((Bt, 64), jnp.bfloat16)
    h1p_ref[L + 1] = jnp.zeros((Bt, 64), jnp.bfloat16)
    h1p_ref[pl.ds(1, L)] = h1.astype(jnp.bfloat16).reshape(L, Bt, 64)

    # ---- conv2 (k=3, p=1): three K=64 taps accumulated into `acc`.
    for t in range(3):
        a_t = h1p_ref[pl.ds(t, L)].reshape(M, 64)
        acc = acc + jnp.dot(a_t, w2_ref[t], preferred_element_type=jnp.float32)

    # ---- residual ReLU, then mean over length = leading-axis sum (1/L is
    # pre-folded into wfc).
    out = jnp.maximum(acc, 0.0).reshape(L, Bt, 128)
    pooled = jnp.sum(out, axis=0)          # (Bt, 128) f32

    # ---- fc -> one lane-dense (Bt, NC_pad) store per block (f32 matmul).
    logits = jnp.dot(pooled, wfc_ref[...],
                     preferred_element_type=jnp.float32) + bfc_ref[...]
    o_ref[0] = logits


def _round_up(v, m):
    return -(-v // m) * m


def _chip_plan():
    """Best-effort (num_tensorcores, scoped VMEM budget bytes) for this chip."""
    kind = ""
    try:
        kind = getattr(jax.devices()[0], "device_kind", "").lower()
    except Exception:
        pass
    if "v7" in kind:
        return 2, 48 * 1024 * 1024          # 2 TCs/chip, 64 MiB VMEM per TC
    if "v4" in kind or "v5p" in kind:
        return 2, 64 * 1024 * 1024          # megacore generations
    if kind:
        return 1, 64 * 1024 * 1024          # v5e / v6e: 1 TC, 128 MiB VMEM
    return 1, 32 * 1024 * 1024              # unknown: conservative default


def _grid_plan(B, L):
    """Pick (num_blocks, per-block batch Bt, vmem_limit) per chip generation."""
    cores, vmem_budget = _chip_plan()
    # Rough lane-padded per-sample VMEM footprint: bf16 im2col tile (double-
    # buffered) + bf16 h1p scratch + live f32 (L, 192/128) working set + slack.
    per_sample = (2 * L * 128 * 2
                  + (L + 2) * 128 * 2
                  + L * 4 * (256 + 3 * 128)
                  + 8 * 1024)
    bt_cap = max(8, min(512, (vmem_budget // per_sample) // 8 * 8))
    num_blocks = cores if B >= cores else 1
    bt = _round_up(_round_up(B, num_blocks) // num_blocks, 8)
    while bt > bt_cap:
        num_blocks *= 2
        bt = _round_up(_round_up(B, num_blocks) // num_blocks, 8)
    return num_blocks, bt, vmem_budget


@jax.jit
def simple_resnet1d_pallas(x, params):
    """x: (B, C_in, L) float32 (PyTorch NCL layout).  Returns (B, num_classes)."""
    B, Cin, L = x.shape
    num_blocks, bt, vmem_budget = _grid_plan(B, L)
    b_pad = num_blocks * bt

    # ---- glue: im2col the input with L on the leading axis, bf16 operands.
    x_t = jnp.transpose(x, (2, 0, 1))                         # (L, B, Cin)
    x_t = jnp.pad(x_t, ((1, 1), (0, b_pad - B), (0, 0)))      # (L+2, B_pad, Cin)
    xim = jnp.concatenate([x_t[0:L], x_t[1:L + 1], x_t[2:L + 2]], axis=-1)
    xim = xim.astype(jnp.bfloat16)                            # (L, B_pad, 3*Cin)

    # ---- glue: fused conv1+downsample weight (3*Cin, 192) = [ds(128) | c1(64)].
    w1 = jnp.transpose(params["conv1_w"], (2, 1, 0)).reshape(3 * Cin, 64)
    wd = params["down_w"][:, :, 0].T                          # (Cin, 128)
    wa = jnp.zeros((3 * Cin, 192), jnp.float32)
    wa = wa.at[Cin:2 * Cin, :128].set(wd)                     # center tap only
    wa = wa.at[:, 128:192].set(w1)
    wa = wa.astype(jnp.bfloat16)
    ba = jnp.concatenate([params["down_b"], params["conv1_b"]]
                         ).reshape(1, 192).astype(jnp.float32)

    w2 = jnp.transpose(params["conv2_w"], (2, 1, 0)).astype(jnp.bfloat16)  # (3,64,128)
    b2 = params["conv2_b"].reshape(1, 128).astype(jnp.float32)

    NC = params["fc_w"].shape[0]
    NC_pad = pl.cdiv(NC, 128) * 128                           # lane-dense output
    wfc = jnp.zeros((128, NC_pad), jnp.float32).at[:, :NC].set(
        params["fc_w"].T / float(L))                          # 1/L folded in
    bfc = jnp.zeros((1, NC_pad), jnp.float32).at[:, :NC].set(
        params["fc_b"].reshape(1, NC))

    out = pl.pallas_call(
        _resnet1d_kernel,
        out_shape=jax.ShapeDtypeStruct((num_blocks, bt, NC_pad), jnp.float32),
        grid_spec=pltpu.PrefetchScalarGridSpec(
            num_scalar_prefetch=0,
            grid=(num_blocks,),
            in_specs=[
                pl.BlockSpec((L, bt, 3 * Cin), lambda i: (0, i, 0)),   # xim
                pl.BlockSpec((3 * Cin, 192),   lambda i: (0, 0)),      # wa
                pl.BlockSpec((1, 192),         lambda i: (0, 0)),      # ba
                pl.BlockSpec((3, 64, 128),     lambda i: (0, 0, 0)),   # w2
                pl.BlockSpec((1, 128),         lambda i: (0, 0)),      # b2
                pl.BlockSpec((128, NC_pad),    lambda i: (0, 0)),      # wfc
                pl.BlockSpec((1, NC_pad),      lambda i: (0, 0)),      # bfc
            ],
            out_specs=pl.BlockSpec((1, bt, NC_pad), lambda i: (i, 0, 0)),
            scratch_shapes=[pltpu.VMEM((L + 2, bt, 64), jnp.bfloat16)],
        ),
        compiler_params=pltpu.CompilerParams(
            dimension_semantics=("parallel",),
            vmem_limit_bytes=vmem_budget),
    )(xim, wa, ba, w2, b2, wfc, bfc)

    return out.reshape(b_pad, NC_pad)[:B, :NC]


def reference_forward(x, params):
    """Pure-JAX f32 reference matching PyTorch semantics (NCL, OIK weights)."""
    dn = ("NCH", "OIH", "NCH")
    h1 = lax.conv_general_dilated(x, params["conv1_w"], (1,), [(1, 1)],
                                  dimension_numbers=dn) + params["conv1_b"][None, :, None]
    h1 = jnp.maximum(h1, 0.0)
    h2 = lax.conv_general_dilated(h1, params["conv2_w"], (1,), [(1, 1)],
                                  dimension_numbers=dn) + params["conv2_b"][None, :, None]
    ds = lax.conv_general_dilated(x, params["down_w"], (1,), [(0, 0)],
                                  dimension_numbers=dn) + params["down_b"][None, :, None]
    out = jnp.maximum(h2 + ds, 0.0)
    m = jnp.mean(out, axis=2)                           # (B, 128)
    return m @ params["fc_w"].T + params["fc_b"]


def init_params(key, in_channels, num_classes):
    ks = jax.random.split(key, 8)
    scale = 0.1
    return {
        "conv1_w": scale * jax.random.normal(ks[0], (64, in_channels, 3), jnp.float32),
        "conv1_b": scale * jax.random.normal(ks[1], (64,), jnp.float32),
        "conv2_w": scale * jax.random.normal(ks[2], (128, 64, 3), jnp.float32),
        "conv2_b": scale * jax.random.normal(ks[3], (128,), jnp.float32),
        "down_w": scale * jax.random.normal(ks[4], (128, in_channels, 1), jnp.float32),
        "down_b": scale * jax.random.normal(ks[5], (128,), jnp.float32),
        "fc_w":   scale * jax.random.normal(ks[6], (num_classes, 128), jnp.float32),
        "fc_b":   scale * jax.random.normal(ks[7], (num_classes,), jnp.float32),
    }


if __name__ == "__main__":
    B, C_IN, L, NUM_CLASSES = 2, 4, 16, 5

    k_x, k_p = jax.random.split(jax.random.PRNGKey(0))
    x = jax.random.normal(k_x, (B, C_IN, L), jnp.float32)
    params = init_params(k_p, C_IN, NUM_CLASSES)

    out = jax.block_until_ready(simple_resnet1d_pallas(x, params))
    ref = jax.block_until_ready(reference_forward(x, params))

    assert out.shape == (B, NUM_CLASSES), out.shape
    # bf16 matmul operands (im2col x, fused conv weights, staged h1) vs f32 ref.
    assert jnp.allclose(out, ref, rtol=2e-2, atol=2e-2), (out, ref)

    print("KERNEL_OK")
</pallas_src>

<mosaic_0001>
module attributes {stable_mosaic.version = 11 : i64} {
  func.func @_resnet1d_kernel(%arg0: i32, %arg1: memref<16x8x12xbf16, #tpu.memory_space<vmem>>, %arg2: memref<12x192xbf16, #tpu.memory_space<vmem>>, %arg3: memref<1x192xf32, #tpu.memory_space<vmem>>, %arg4: memref<3x64x128xbf16, #tpu.memory_space<vmem>>, %arg5: memref<1x128xf32, #tpu.memory_space<vmem>>, %arg6: memref<128x128xf32, #tpu.memory_space<vmem>>, %arg7: memref<1x128xf32, #tpu.memory_space<vmem>>, %arg8: memref<1x8x128xf32, #tpu.memory_space<vmem>>, %arg9: memref<18x8x64xbf16, #tpu.memory_space<vmem>>) attributes {dimension_semantics = [#tpu.dimension_semantics<parallel>], iteration_bounds = array<i64: 1>, scalar_prefetch = 0 : i64, scratch_operands = 1 : i64, tpu.core_type = #tpu.core_type<tc>, window_params = [{transform_indices = @transform_0, window_bounds = array<i64: 16, 8, 12>}, {pipeline_mode = #tpu.pipeline_mode<synchronous>, transform_indices = @transform_1, window_bounds = array<i64: 12, 192>}, {pipeline_mode = #tpu.pipeline_mode<synchronous>, transform_indices = @transform_2, window_bounds = array<i64: 1, 192>}, {pipeline_mode = #tpu.pipeline_mode<synchronous>, transform_indices = @transform_3, window_bounds = array<i64: 3, 64, 128>}, {pipeline_mode = #tpu.pipeline_mode<synchronous>, transform_indices = @transform_4, window_bounds = array<i64: 1, 128>}, {pipeline_mode = #tpu.pipeline_mode<synchronous>, transform_indices = @transform_5, window_bounds = array<i64: 128, 128>}, {pipeline_mode = #tpu.pipeline_mode<synchronous>, transform_indices = @transform_6, window_bounds = array<i64: 1, 128>}, {transform_indices = @transform_7, window_bounds = array<i64: 1, 8, 128>}]} {
    %c0 = arith.constant 0 : index
    %c0_0 = arith.constant 0 : index
    %c0_1 = arith.constant 0 : index
    %0 = vector.load %arg1[%c0, %c0_0, %c0_1] : memref<16x8x12xbf16, #tpu.memory_space<vmem>>, vector<16x8x12xbf16>
    %1 = vector.shape_cast %0 : vector<16x8x12xbf16> to vector<128x12xbf16>
    %c0_2 = arith.constant 0 : index
    %c0_3 = arith.constant 0 : index
    %2 = vector.load %arg2[%c0_2, %c0_3] : memref<12x192xbf16, #tpu.memory_space<vmem>>, vector<12x192xbf16>
    %cst = arith.constant dense<0.000000e+00> : vector<128x192xf32>
    %3 = tpu.matmul %1, %2, %cst {dimension_numbers = #tpu.dot_dimension_numbers<[1], [0], [0], [1], [0, 0, 1, 1], [], []>} : vector<128x12xbf16>, vector<12x192xbf16>, vector<128x192xf32> -> vector<128x192xf32>
    %c0_4 = arith.constant 0 : index
    %c0_5 = arith.constant 0 : index
    %4 = vector.load %arg3[%c0_4, %c0_5] : memref<1x192xf32, #tpu.memory_space<vmem>>, vector<1x192xf32>
    %5 = vector.broadcast %4 : vector<1x192xf32> to vector<128x192xf32>
    %6 = arith.addf %3, %5 : vector<128x192xf32>
    %7 = vector.extract_strided_slice %6 {offsets = [0, 0], sizes = [128, 128], strides = [1, 1]} : vector<128x192xf32> to vector<128x128xf32>
    %c0_6 = arith.constant 0 : index
    %c0_7 = arith.constant 0 : index
    %8 = vector.load %arg5[%c0_6, %c0_7] : memref<1x128xf32, #tpu.memory_space<vmem>>, vector<1x128xf32>
    %9 = vector.broadcast %8 : vector<1x128xf32> to vector<128x128xf32>
    %10 = arith.addf %7, %9 : vector<128x128xf32>
    %11 = vector.extract_strided_slice %6 {offsets = [0, 128], sizes = [128, 64], strides = [1, 1]} : vector<128x192xf32> to vector<128x64xf32>
    %cst_8 = arith.constant 0.000000e+00 : f32
    %12 = vector.broadcast %cst_8 : f32 to vector<128x64xf32>
    %13 = arith.maximumf %11, %12 : vector<128x64xf32>
    %cst_9 = arith.constant 0.000000e+00 : bf16
    %14 = vector.broadcast %cst_9 : bf16 to vector<8x64xbf16>
    %c0_10 = arith.constant 0 : index
    %c0_11 = arith.constant 0 : index
    %c0_12 = arith.constant 0 : index
    %15 = vector.load %arg9[%c0_10, %c0_11, %c0_12] : memref<18x8x64xbf16, #tpu.memory_space<vmem>>, vector<1x8x64xbf16>
    %16 = vector.shape_cast %15 : vector<1x8x64xbf16> to vector<8x64xbf16>
    %17 = vector.shape_cast %14 : vector<8x64xbf16> to vector<1x8x64xbf16>
    tpu.vector_store %arg9[%c0_10, %c0_11, %c0_12], %17 {strides = array<i32>} : memref<18x8x64xbf16, #tpu.memory_space<vmem>>, vector<1x8x64xbf16>,
    %cst_13 = arith.constant 0.000000e+00 : bf16
    %18 = vector.broadcast %cst_13 : bf16 to vector<8x64xbf16>
    %c17 = arith.constant 17 : index
    %c0_14 = arith.constant 0 : index
    %c0_15 = arith.constant 0 : index
    %19 = vector.load %arg9[%c17, %c0_14, %c0_15] : memref<18x8x64xbf16, #tpu.memory_space<vmem>>, vector<1x8x64xbf16>
    %20 = vector.shape_cast %19 : vector<1x8x64xbf16> to vector<8x64xbf16>
    %21 = vector.shape_cast %18 : vector<8x64xbf16> to vector<1x8x64xbf16>
    tpu.vector_store %arg9[%c17, %c0_14, %c0_15], %21 {strides = array<i32>} : memref<18x8x64xbf16, #tpu.memory_space<vmem>>, vector<1x8x64xbf16>,
    %22 = arith.truncf %13 : vector<128x64xf32> to vector<128x64xbf16>
    %23 = vector.shape_cast %22 : vector<128x64xbf16> to vector<16x8x64xbf16>
    %c1 = arith.constant 1 : index
    %c0_16 = arith.constant 0 : index
    %c0_17 = arith.constant 0 : index
    %24 = vector.load %arg9[%c1, %c0_16, %c0_17] : memref<18x8x64xbf16, #tpu.memory_space<vmem>>, vector<16x8x64xbf16>
    tpu.vector_store %arg9[%c1, %c0_16, %c0_17], %23 {strides = array<i32>} : memref<18x8x64xbf16, #tpu.memory_space<vmem>>, vector<16x8x64xbf16>,
    %c0_18 = arith.constant 0 : index
    %c0_19 = arith.constant 0 : index
    %c0_20 = arith.constant 0 : index
    %25 = vector.load %arg9[%c0_18, %c0_19, %c0_20] : memref<18x8x64xbf16, #tpu.memory_space<vmem>>, vector<16x8x64xbf16>
    %26 = vector.shape_cast %25 : vector<16x8x64xbf16> to vector<128x64xbf16>
    %c0_21 = arith.constant 0 : index
    %c0_22 = arith.constant 0 : index
    %c0_23 = arith.constant 0 : index
    %27 = vector.load %arg4[%c0_21, %c0_22, %c0_23] : memref<3x64x128xbf16, #tpu.memory_space<vmem>>, vector<1x64x128xbf16>
    %28 = vector.shape_cast %27 : vector<1x64x128xbf16> to vector<64x128xbf16>
    %cst_24 = arith.constant dense<0.000000e+00> : vector<128x128xf32>
    %29 = tpu.matmul %26, %28, %cst_24 {dimension_numbers = #tpu.dot_dimension_numbers<[1], [0], [0], [1], [0, 0, 1, 1], [], []>} : vector<128x64xbf16>, vector<64x128xbf16>, vector<128x128xf32> -> vector<128x128xf32>
    %30 = arith.addf %10, %29 : vector<128x128xf32>
    %c1_25 = arith.constant 1 : index
    %c0_26 = arith.constant 0 : index
    %c0_27 = arith.constant 0 : index
    %31 = vector.load %arg9[%c1_25, %c0_26, %c0_27] : memref<18x8x64xbf16, #tpu.memory_space<vmem>>, vector<16x8x64xbf16>
    %32 = vector.shape_cast %31 : vector<16x8x64xbf16> to vector<128x64xbf16>
    %c1_28 = arith.constant 1 : index
    %c0_29 = arith.constant 0 : index
    %c0_30 = arith.constant 0 : index
    %33 = vector.load %arg4[%c1_28, %c0_29, %c0_30] : memref<3x64x128xbf16, #tpu.memory_space<vmem>>, vector<1x64x128xbf16>
    %34 = vector.shape_cast %33 : vector<1x64x128xbf16> to vector<64x128xbf16>
    %cst_31 = arith.constant dense<0.000000e+00> : vector<128x128xf32>
    %35 = tpu.matmul %32, %34, %cst_31 {dimension_numbers = #tpu.dot_dimension_numbers<[1], [0], [0], [1], [0, 0, 1, 1], [], []>} : vector<128x64xbf16>, vector<64x128xbf16>, vector<128x128xf32> -> vector<128x128xf32>
    %36 = arith.addf %30, %35 : vector<128x128xf32>
    %c2 = arith.constant 2 : index
    %c0_32 = arith.constant 0 : index
    %c0_33 = arith.constant 0 : index
    %37 = vector.load %arg9[%c2, %c0_32, %c0_33] : memref<18x8x64xbf16, #tpu.memory_space<vmem>>, vector<16x8x64xbf16>
    %38 = vector.shape_cast %37 : vector<16x8x64xbf16> to vector<128x64xbf16>
    %c2_34 = arith.constant 2 : index
    %c0_35 = arith.constant 0 : index
    %c0_36 = arith.constant 0 : index
    %39 = vector.load %arg4[%c2_34, %c0_35, %c0_36] : memref<3x64x128xbf16, #tpu.memory_space<vmem>>, vector<1x64x128xbf16>
    %40 = vector.shape_cast %39 : vector<1x64x128xbf16> to vector<64x128xbf16>
    %cst_37 = arith.constant dense<0.000000e+00> : vector<128x128xf32>
    %41 = tpu.matmul %38, %40, %cst_37 {dimension_numbers = #tpu.dot_dimension_numbers<[1], [0], [0], [1], [0, 0, 1, 1], [], []>} : vector<128x64xbf16>, vector<64x128xbf16>, vector<128x128xf32> -> vector<128x128xf32>
    %42 = arith.addf %36, %41 : vector<128x128xf32>
    %cst_38 = arith.constant 0.000000e+00 : f32
    %43 = vector.broadcast %cst_38 : f32 to vector<128x128xf32>
    %44 = arith.maximumf %42, %43 : vector<128x128xf32>
    %45 = vector.shape_cast %44 : vector<128x128xf32> to vector<16x8x128xf32>
    %cst_39 = arith.constant dense<0.000000e+00> : vector<8x128xf32>
    %46 = vector.multi_reduction <add>, %45, %cst_39 [0] : vector<16x8x128xf32> to vector<8x128xf32>
    %c0_40 = arith.constant 0 : index
    %c0_41 = arith.constant 0 : index
    %47 = vector.load %arg6[%c0_40, %c0_41] : memref<128x128xf32, #tpu.memory_space<vmem>>, vector<128x128xf32>
    %cst_42 = arith.constant dense<0.000000e+00> : vector<8x128xf32>
    %48 = tpu.matmul %46, %47, %cst_42 {dimension_numbers = #tpu.dot_dimension_numbers<[1], [0], [0], [1], [0, 0, 1, 1], [], []>} : vector<8x128xf32>, vector<128x128xf32>, vector<8x128xf32> -> vector<8x128xf32>
    %c0_43 = arith.constant 0 : index
    %c0_44 = arith.constant 0 : index
    %49 = vector.load %arg7[%c0_43, %c0_44] : memref<1x128xf32, #tpu.memory_space<vmem>>, vector<1x128xf32>
    %50 = vector.broadcast %49 : vector<1x128xf32> to vector<8x128xf32>
    %51 = arith.addf %48, %50 : vector<8x128xf32>
    %c0_45 = arith.constant 0 : index
    %c0_46 = arith.constant 0 : index
    %c0_47 = arith.constant 0 : index
    %52 = vector.load %arg8[%c0_45, %c0_46, %c0_47] : memref<1x8x128xf32, #tpu.memory_space<vmem>>, vector<1x8x128xf32>
    %53 = vector.shape_cast %52 : vector<1x8x128xf32> to vector<8x128xf32>
    %54 = vector.shape_cast %51 : vector<8x128xf32> to vector<1x8x128xf32>
    tpu.vector_store %arg8[%c0_45, %c0_46, %c0_47], %54 {strides = array<i32>} : memref<1x8x128xf32, #tpu.memory_space<vmem>>, vector<1x8x128xf32>,
    return
  }
  func.func @transform_0(%arg0: i32) -> (i32, i32, i32) {
    %c0_i32 = arith.constant 0 : i32
    %c0_i32_0 = arith.constant 0 : i32
    %c0_i32_1 = arith.constant 0 : i32
    return %c0_i32, %arg0, %c0_i32_0 : i32, i32, i32
  }
  func.func @transform_1(%arg0: i32) -> (i32, i32) {
    %c0_i32 = arith.constant 0 : i32
    %c0_i32_0 = arith.constant 0 : i32
    %c0_i32_1 = arith.constant 0 : i32
    return %c0_i32, %c0_i32_0 : i32, i32
  }
  func.func @transform_2(%arg0: i32) -> (i32, i32) {
    %c0_i32 = arith.constant 0 : i32
    %c0_i32_0 = arith.constant 0 : i32
    %c0_i32_1 = arith.constant 0 : i32
    return %c0_i32, %c0_i32_0 : i32, i32
  }
  func.func @transform_3(%arg0: i32) -> (i32, i32, i32) {
    %c0_i32 = arith.constant 0 : i32
    %c0_i32_0 = arith.constant 0 : i32
    %c0_i32_1 = arith.constant 0 : i32
    %c0_i32_2 = arith.constant 0 : i32
    return %c0_i32, %c0_i32_0, %c0_i32_1 : i32, i32, i32
  }
  func.func @transform_4(%arg0: i32) -> (i32, i32) {
    %c0_i32 = arith.constant 0 : i32
    %c0_i32_0 = arith.constant 0 : i32
    %c0_i32_1 = arith.constant 0 : i32
    return %c0_i32, %c0_i32_0 : i32, i32
  }
  func.func @transform_5(%arg0: i32) -> (i32, i32) {
    %c0_i32 = arith.constant 0 : i32
    %c0_i32_0 = arith.constant 0 : i32
    %c0_i32_1 = arith.constant 0 : i32
    return %c0_i32, %c0_i32_0 : i32, i32
  }
  func.func @transform_6(%arg0: i32) -> (i32, i32) {
    %c0_i32 = arith.constant 0 : i32
    %c0_i32_0 = arith.constant 0 : i32
    %c0_i32_1 = arith.constant 0 : i32
    return %c0_i32, %c0_i32_0 : i32, i32
  }
  func.func @transform_7(%arg0: i32) -> (i32, i32, i32) {
    %c0_i32 = arith.constant 0 : i32
    %c0_i32_0 = arith.constant 0 : i32
    %c0_i32_1 = arith.constant 0 : i32
    return %arg0, %c0_i32, %c0_i32_0 : i32, i32, i32
  }
}

</mosaic_0001>

<bundles_post_ra>
// kernel: simple_resnet1d_pallas.1
= control target key start
LH: loop header
LB: loop body
LE: loop exit
PB: predicated region body
PF: predicated region fallthrough
CT: control target
= control target key end

     0   :  { %12 = vsyncpa [#allocation4], 0  ;;  %s2252_s0 = inlined_call_operand.hbm [shape: bf16[16,8,12], index: 0, kind: input, shape index: {}]   ;;  %s2253_s1 = inlined_call_operand.hbm [shape: bf16[12,192], index: 1, kind: input, shape index: {}]   ;;  %s2254_s2 = inlined_call_operand.hbm [shape: f32[1,192], index: 2, kind: input, shape index: {}]   ;;  %s2255_s3 = inlined_call_operand.hbm [shape: bf16[3,64,128], index: 3, kind: input, shape index: {}]   ;;  %s2256_s4 = inlined_call_operand.hbm [shape: f32[1,128], index: 4, kind: input, shape index: {}]   ;;  %s2257_s5 = inlined_call_operand.hbm [shape: f32[128,128], index: 5, kind: input, shape index: {}]   ;;  %s2258_s6 = inlined_call_operand.hbm [shape: f32[1,128], index: 6, kind: input, shape index: {}]   ;;  %s2259_s7 = inlined_call_operand.hbm [shape: f32[1,8,128], index: 7, kind: output, shape index: {}]  }
   0x1   :  { %13 = vsyncpa [#allocation7], 0 }
   0x2   :  { %14 = vsyncpa [#allocation10], 0 }
   0x3   :  { %15 = vsyncpa [#allocation13], 0 }
   0x4   :  { %16 = vsyncpa [#allocation5], 0  ;;  %s1832_s24 = smov [#allocation6]   ;;  %s1646_s28 = scalar_lea.hbm %s2253_s1, 256 }
   0x5   :  { %s34_s25 = sshll.u32 %s1832_s24, 4  ;;  %p1647_p0 = scmp.ne.s32.totalorder %s2253_s1, %s1646_s28  ;;  %s35_s25 = int_to_ptr.vmem [resolvable:$true] %s34_s25 }
   0x6   :  { %p1650_p1 = scmp.lt.u32.totalorder %s1646_s28, %s2253_s1 }
   0x8   :  { %p1652_p2 = pnand %p1650_p1, %p1647_p0 }
   0xa   :  { %1655 = shalt.err (!%p1652_p2)
}
   0xb   :  { %s1656_s10 = scalar_lea.vmem %s35_s25, 256  ;;  %p1661_p4 = scmp.lt.s32.totalorder %s35_s25, %s35_s25 }
   0xc   :  { %p1657_p3 = scmp.ne.s32.totalorder %s35_s25, %s1656_s10  ;;  %p1662_p5 = scmp.lt.s32.totalorder %s1656_s10, %s1656_s10 }
   0xe   :  { %p1663_p6 = por %p1662_p5, %p1661_p4 }
  0x10   :  { %p1664_p7 = pnand %p1663_p6, %p1657_p3 }
  0x12   :  { %1667 = shalt.err (!%p1664_p7)
}
  0x13   :  { %s1833_s11 = smov 128   ;;  %s1834_s12 = smov 8  }
  0x14   :  { %40 = dma.hbm_to_vmem [thread:$0]  %s2253_s1, 256, %s35_s25, [#allocation7], %s1833_s11, %s1833_s11, %s1834_s12  }
  0x15   :  { %s1835_s15 = smov [#allocation9]   ;;  %s1836_s17 = smov [#allocation12]  }
  0x16   :  { %s56_s16 = sshll.u32 %s1835_s15, 4  ;;  %s78_s18 = sshll.u32 %s1836_s17, 4  ;;  %s57_s16 = int_to_ptr.vmem [resolvable:$true] %s56_s16  ;;  %s79_s18 = int_to_ptr.vmem [resolvable:$true] %s78_s18 }
  0x17   :  { %s1668_s21 = scalar_lea.hbm %s2255_s3, 1536 }
  0x18   :  { %p1669_p8 = scmp.ne.s32.totalorder %s2255_s3, %s1668_s21  ;;  %p1672_p9 = scmp.lt.u32.totalorder %s1668_s21, %s2255_s3 }
  0x1a   :  { %p1674_p10 = pnand %p1672_p9, %p1669_p8 }
  0x1c   :  { %1677 = shalt.err (!%p1674_p10)
}
  0x1d   :  { %s1678_s1 = scalar_lea.vmem %s57_s16, 1536  ;;  %p1683_p12 = scmp.lt.s32.totalorder %s57_s16, %s57_s16 }
  0x1e   :  { %p1679_p11 = scmp.ne.s32.totalorder %s57_s16, %s1678_s1  ;;  %p1684_p13 = scmp.lt.s32.totalorder %s1678_s1, %s1678_s1 }
  0x20   :  { %p1685_p0 = por %p1684_p13, %p1683_p12 }
  0x22   :  { %p1686_p1 = pnand %p1685_p0, %p1679_p11 }
  0x24   :  { %1689 = shalt.err (!%p1686_p1)
}
  0x25   :  { %s1837_s25 = smov 64   ;;  %s1838_s27 = smov 4  }
  0x26   :  { %62 = dma.hbm_to_vmem [thread:$0]  %s2255_s3, 1536, %s57_s16, [#allocation10], %s1837_s25, %s1837_s25, %s1838_s27  }
  0x27   :  { %s1690_s9 = scalar_lea.hbm %s2257_s5, 2048 }
  0x28   :  { %p1691_p2 = scmp.ne.s32.totalorder %s2257_s5, %s1690_s9  ;;  %p1694_p3 = scmp.lt.u32.totalorder %s1690_s9, %s2257_s5 }
  0x2a   :  { %p1696_p4 = pnand %p1694_p3, %p1691_p2 }
  0x2c   :  { %1699 = shalt.err (!%p1696_p4)
}
  0x2d   :  { %s1700_s17 = scalar_lea.vmem %s79_s18, 2048  ;;  %p1705_p6 = scmp.lt.s32.totalorder %s79_s18, %s79_s18 }
  0x2e   :  { %p1701_p5 = scmp.ne.s32.totalorder %s79_s18, %s1700_s17  ;;  %p1706_p7 = scmp.lt.s32.totalorder %s1700_s17, %s1700_s17 }
  0x30   :  { %p1707_p8 = por %p1706_p7, %p1705_p6 }
  0x32   :  { %p1708_p9 = pnand %p1707_p8, %p1701_p5 }
  0x34   :  { %1711 = shalt.err (!%p1708_p9)
}
  0x35   :  { %84 = dma.hbm_to_vmem [thread:$0]  %s2257_s5, 2048, %s79_s18, [#allocation13], %s1833_s11, %s1833_s11, %s1834_s12  }
  0x36   :  { %s1839_s19 = smov [#allocation3]   ;;  %s1840_s21 = smov [#allocation8]  }
  0x37   :  { %s22_s20 = sshll.u32 %s1839_s19, 4  ;;  %s47_s22 = sshll.u32 %s1840_s21, 4  ;;  %s23_s20 = int_to_ptr.vmem [resolvable:$true] %s22_s20  ;;  %s48_s22 = int_to_ptr.vmem [resolvable:$true] %s47_s22 }
  0x38   :  { %s1712_s26 = scalar_lea.hbm %s2252_s0, 1024 }
  0x39   :  { %p1713_p10 = scmp.ne.s32.totalorder %s2252_s0, %s1712_s26  ;;  %p1716_p11 = scmp.lt.u32.totalorder %s1712_s26, %s2252_s0 }
  0x3b   :  { %p1718_p12 = pnand %p1716_p11, %p1713_p10 }
  0x3d   :  { %1721 = shalt.err (!%p1718_p12)
}
  0x3e   :  { %s1722_s5 = scalar_lea.vmem %s23_s20, 1024  ;;  %p1727_p0 = scmp.lt.s32.totalorder %s23_s20, %s23_s20 }
  0x3f   :  { %p1723_p13 = scmp.ne.s32.totalorder %s23_s20, %s1722_s5  ;;  %p1728_p1 = scmp.lt.s32.totalorder %s1722_s5, %s1722_s5 }
  0x41   :  { %p1729_p2 = por %p1728_p1, %p1727_p0 }
  0x43   :  { %p1730_p3 = pnand %p1729_p2, %p1723_p13 }
  0x45   :  { %1733 = shalt.err (!%p1730_p3)
}
  0x46   :  { %28 = dma.hbm_to_vmem [thread:$0]  %s2252_s0, 1024, %s23_s20, [#allocation4], %s1837_s25, %s1837_s25, %s1838_s27  }
  0x47   :  { %s1734_s9 = scalar_lea.hbm %s2254_s2, 32 }
  0x48   :  { %p1735_p4 = scmp.ne.s32.totalorder %s2254_s2, %s1734_s9  ;;  %p1738_p5 = scmp.lt.u32.totalorder %s1734_s9, %s2254_s2 }
  0x4a   :  { %p1740_p6 = pnand %p1738_p5, %p1735_p4 }
  0x4c   :  { %1743 = shalt.err (!%p1740_p6)
}
  0x4d   :  { %s1744_s17 = scalar_lea.vmem %s48_s22, 32  ;;  %p1749_p8 = scmp.lt.s32.totalorder %s48_s22, %s48_s22 }
  0x4e   :  { %p1745_p7 = scmp.ne.s32.totalorder %s48_s22, %s1744_s17  ;;  %p1750_p9 = scmp.lt.s32.totalorder %s1744_s17, %s1744_s17 }
  0x50   :  { %p1751_p10 = por %p1750_p9, %p1749_p8 }
  0x52   :  { %p1752_p11 = pnand %p1751_p10, %p1745_p7 }
  0x54   :  { %1755 = shalt.err (!%p1752_p11)
}
  0x55   :  { %50 = dma.hbm_to_vmem [thread:$0]  %s2254_s2, 32, %s48_s22, [#allocation7]  }
  0x56   :  { %s1841_s27 = smov [#allocation11]   ;;  %s1842_s16 = smov [#allocation14]  }
  0x57   :  { %s69_s3 = sshll.u32 %s1841_s27, 4  ;;  %s91_s19 = sshll.u32 %s1842_s16, 4  ;;  %s70_s3 = int_to_ptr.vmem [resolvable:$true] %s69_s3  ;;  %s92_s19 = int_to_ptr.vmem [resolvable:$true] %s91_s19 }
  0x58   :  { %s1756_s23 = scalar_lea.hbm %s2256_s4, 16 }
  0x59   :  { %p1757_p12 = scmp.ne.s32.totalorder %s2256_s4, %s1756_s23  ;;  %p1760_p13 = scmp.lt.u32.totalorder %s1756_s23, %s2256_s4 }
  0x5b   :  { %p1762_p0 = pnand %p1760_p13, %p1757_p12 }
  0x5d   :  { %1765 = shalt.err (!%p1762_p0)
}
  0x5e   :  { %s1766_s2 = scalar_lea.vmem %s70_s3, 16  ;;  %s1770_s22 = scalar_lea.vmem %s70_s3, 32 }
  0x5f   :  { %p1767_p1 = scmp.ne.s32.totalorder %s70_s3, %s1766_s2  ;;  %p1771_p2 = scmp.lt.s32.totalorder %s70_s3, %s70_s3 }
  0x60   :  { %p1772_p3 = scmp.lt.s32.totalorder %s1770_s22, %s1766_s2 }
  0x62   :  { %p1773_p4 = por %p1772_p3, %p1771_p2 }
  0x64   :  { %p1774_p5 = pnand %p1773_p4, %p1767_p1 }
  0x66   :  { %1777 = shalt.err (!%p1774_p5)
}
  0x67   :  { %72 = dma.hbm_to_vmem [thread:$0]  %s2256_s4, 16, %s70_s3, [#allocation10]  }
  0x68   :  { %s1778_s12 = scalar_lea.hbm %s2258_s6, 16 }
  0x69   :  { %p1779_p6 = scmp.ne.s32.totalorder %s2258_s6, %s1778_s12  ;;  %p1782_p7 = scmp.lt.u32.totalorder %s1778_s12, %s2258_s6 }
  0x6b   :  { %p1784_p8 = pnand %p1782_p7, %p1779_p6 }
  0x6d   :  { %1787 = shalt.err (!%p1784_p8)
}
  0x6e   :  { %s1788_s13 = scalar_lea.vmem %s92_s19, 16  ;;  %s1792_s14 = scalar_lea.vmem %s92_s19, 32 }
  0x6f   :  { %p1789_p9 = scmp.ne.s32.totalorder %s92_s19, %s1788_s13  ;;  %p1793_p10 = scmp.lt.s32.totalorder %s92_s19, %s92_s19 }
  0x70   :  { %p1794_p11 = scmp.lt.s32.totalorder %s1792_s14, %s1788_s13 }
  0x72   :  { %p1795_p12 = por %p1794_p11, %p1793_p10 }
  0x74   :  { %p1796_p13 = pnand %p1795_p12, %p1789_p9 }
  0x76   :  { %1799 = shalt.err (!%p1796_p13)
}
  0x77   :  { %94 = dma.hbm_to_vmem [thread:$0]  %s2258_s6, 16, %s92_s19, [#allocation13]  }
  0x78   :  { %1822 = dma.done.wait [#allocation4], 1024  }
  0x79   :  { %1823 = vsyncadd [#allocation4], 4294966272 }
  0x7a   :  { %1824 = dma.done.wait [#allocation7], 288  }
  0x7b   :  { %1825 = vsyncadd [#allocation7], 4294967008 }
  0x7c   :  { %1826 = dma.done.wait [#allocation10], 1552  }
  0x7d   :  { %1827 = vsyncadd [#allocation10], 4294965744 }
  0x7e   :  { %1828 = dma.done.wait [#allocation13], 2064  }
  0x7f   :  { %1829 = vsyncadd [#allocation13], 4294965232  ;;  %v1843_v0 = vmov 0   ;;  %vm220_vm0 = vcmask 1045504   ;;  %v1602_v4 = vld [vmem:[#allocation3] sm:$0xff]   ;;  %vm195_vm1 = vcmask 97280   ;;  %v137_v21 = vlaneseq }
  0x80   :  { %259 = vmatprep.mubr.bf16.mxu0 %v1843_v0  ;;  %v1599_v1 = vld [vmem:[#allocation6 + $0x4] ss:$8 sps:$4 sm:$0x3f]   ;;  %v1601_v2 = vld [vmem:[#allocation6] ss:$8 sps:$4 sm:$0x3f]  }
  0x81   :  { %1296 = vmatprep.subr.msk.bf16.mxu0 %vm220_vm0, %v1599_v1  ;;  %v222_v3 = vsel %vm220_vm0, %v1601_v2, 0  ;;  %v1603_v5 = vld [vmem:[#allocation3 + $0x8] sm:$0xff]   ;;  %v1604_v6 = vld [vmem:[#allocation3 + $0x10] sm:$0xff]   ;;  %v1605_v7 = vld [vmem:[#allocation3 + $0x18] sm:$0xff]   ;;  %vm379_vm2 = vcmask 519168   ;;  %v1994_v22 = vshrl.u32 %v137_v21, 7 }
  0x82   :  { %228 = vmatpush1.bf16.msra.mxu0 %v222_v3  ;;  %v1606_v8 = vld [vmem:[#allocation3 + $0x20] sm:$0xff]   ;;  %v1607_v9 = vld [vmem:[#allocation3 + $0x28] sm:$0xff]   ;;  %v1608_v10 = vld [vmem:[#allocation3 + $0x30] sm:$0xff]   ;;  %380 = vst.msk [vmem:[#allocation2] sm:$0xf] %vm379_vm2, %v1843_v0  ;;  %vm552_vm3 = vcmask 523264  }
  0x83   :  { %v1609_v11 = vld [vmem:[#allocation3 + $0x38] sm:$0xff]   ;;  %382 = vst.msk [vmem:[#allocation2 + $0x44] sm:$0xf] %vm379_vm2, %v1843_v0  ;;  %v1612_v14 = vld [vmem:[#allocation9 + $0x10] sm:$0xff]   ;;  %v1615_v16 = vld [vmem:[#allocation9 + $0x18] sm:$0xff]   ;;  %v143_v23 = vsub.s32 1, %v1994_v22 }
  0x84   :  { %v1610_v12 = vld [vmem:[#allocation9] sm:$0xff]   ;;  %v1611_v13 = vld [vmem:[#allocation9 + $0x8] sm:$0xff]   ;;  %v1618_v18 = vld [vmem:[#allocation9 + $0x50] sm:$0xff]   ;;  %vm1845_vm4 = vmmov 0   ;;  %s1847_s6 = smov [#allocation15]  }
  0x85   :  { %1297 = vmatmul.mubr.msk.bf16.vlgmr.msra.gmra.mrb[0].mxu0 %vm195_vm1, %v1602_v4  ;;  %1452 = vmatprep.subr.bf16.mxu1 %v1610_v12  ;;  %v1614_v15 = vld [vmem:[#allocation9 + $0x40] sm:$0xff]   ;;  %v1616_v17 = vld [vmem:[#allocation9 + $0x48] sm:$0xff]   ;;  %v1620_v19 = vld [vmem:[#allocation9 + $0x58] sm:$0xff]   ;;  %s1274_s17 = sshll.u32 %s1847_s6, 4  ;;  %s1275_s17 = int_to_ptr.vmem [resolvable:$true] %s1274_s17 }
  0x86   :  { %269 = vmatprep.mubr.bf16.mxu0 %v1843_v0  ;;  %1453 = vmatpush3.bf16.msra.mxu1 %v1610_v12  ;;  %v1625_v20 = vld [vmem:[#allocation9 + $0x20] sm:$0xff]   ;;  %v1997_v24 = vld [vmem:[#allocation8] sm:$0x3]  ;;  %v1628_v56 = vld [vmem:[#allocation9 + $0x28] sm:$0xff]   ;;  %s1800_s0 = scalar_lea.vmem %s1275_s17, 128  ;;  %p1805_p1 = scmp.lt.s32.totalorder %s1275_s17, %s1275_s17 }
  0x87   :  { %1454 = vmatprep.subr.bf16.mxu1 %v1611_v13  ;;  %1500 = vmatprep.subr.bf16.mxu0 %v1614_v15  ;;  %v2000_v25 = vrot.slane %v1997_v24, %v143_v23  ;;  %v1631_v1 = vld [vmem:[#allocation9 + $0x30] sm:$0xff]   ;;  %p1801_p0 = scmp.ne.s32.totalorder %s1275_s17, %s1800_s0  ;;  %p1806_p2 = scmp.lt.s32.totalorder %s1800_s0, %s1800_s0 }
  0x88   :  { %1501 = vmatpush3.bf16.msra.mxu0 %v1614_v15 }
  0x89   :  { %1502 = vmatprep.subr.bf16.mxu0 %v1616_v17  ;;  %p1807_p3 = por %p1806_p2, %p1805_p1 }
  0x8a   :  { %1455 = vmatpush3.bf16.msra.mxu1 %v1611_v13 }
  0x8b   :  { %1456 = vmatprep.subr.bf16.mxu1 %v1612_v14  ;;  %p1808_p4 = pnand %p1807_p3, %p1801_p0 }
  0x8c   :  { %1503 = vmatpush3.bf16.msra.mxu0 %v1616_v17 }
  0x8d   :  { %1298 = vmatmul.mubr.msk.bf16.gmra.mrb[4].mxu0 %vm195_vm1, %v1603_v5  ;;  %1504 = vmatprep.subr.bf16.mxu0 %v1618_v18 }
  0x8e   :  { %279 = vmatprep.mubr.bf16.mxu0 %v1843_v0  ;;  %1457 = vmatpush3.bf16.msra.mxu1 %v1612_v14 }
  0x8f   :  { %1458 = vmatprep.subr.bf16.mxu1 %v1615_v16 }
  0x90   :  { %1505 = vmatpush3.bf16.msra.mxu0 %v1618_v18 }
  0x91   :  { %1506 = vmatprep.subr.bf16.mxu0 %v1620_v19 }
  0x92   :  { %1459 = vmatpush3.bf16.msra.mxu1 %v1615_v16 }
  0x93   :  { %1476 = vmatprep.subr.bf16.mxu1 %v1625_v20 }
  0x94   :  { %1507 = vmatpush3.bf16.msra.mxu0 %v1620_v19 }
  0x95   :  { %1299 = vmatmul.mubr.msk.bf16.gmra.mrb[8].mxu0 %vm195_vm1, %v1604_v6  ;;  %v1634_v6 = vld [vmem:[#allocation9 + $0x38] sm:$0xff]  }
  0x96   :  { %289 = vmatprep.mubr.bf16.mxu0 %v1843_v0 }
  0x9d   :  { %1300 = vmatmul.mubr.msk.bf16.gmra.mrb[12].mxu0 %vm195_vm1, %v1605_v7 }
  0x9e   :  { %299 = vmatprep.mubr.bf16.mxu0 %v1843_v0 }
  0xa5   :  { %1301 = vmatmul.mubr.msk.bf16.gmra.mrb[16].mxu0 %vm195_vm1, %v1606_v8 }
  0xa6   :  { %309 = vmatprep.mubr.bf16.mxu0 %v1843_v0 }
  0xad   :  { %1302 = vmatmul.mubr.msk.bf16.gmra.mrb[20].mxu0 %vm195_vm1, %v1607_v9 }
  0xae   :  { %319 = vmatprep.mubr.bf16.mxu0 %v1843_v0 }
  0xb5   :  { %1303 = vmatmul.mubr.msk.bf16.gmra.mrb[24].mxu0 %vm195_vm1, %v1608_v10 }
  0xb6   :  { %329 = vmatprep.mubr.bf16.mxu0 %v1843_v0 }
  0xbd   :  { %1304 = vmatmul.mubr.msk.bf16.gmra.mrb[28].mxu0 %vm195_vm1, %v1609_v11 }
 0x158   :  { %v2002_v26 = vpop.f32.mrb[0].mxu0 }
 0x159   :  { %v263_v27 = vpop.f32.mrb[1].mxu0 }
 0x15a   :  { %v264_v28 = vadd.f32 %v263_v27, %v2000_v25  ;;  %v2005_v29 = vpop.f32.mrb[2].mxu0 }
 0x15b   :  { %v267_v30 = vpop.f32.mrb[3].mxu0 }
 0x15c   :  { %v363_v31 = vmax.f32 %v264_v28, 0.0  ;;  %v268_v32 = vadd.f32 %v267_v30, %v2000_v25 }
 0x15e   :  { %v1383_v33 = vpack.c.bf16 %v363_v31, %v363_v31  ;;  %v364_v34 = vmax.f32 %v268_v32, 0.0 }
 0x160   :  { %448 = vst.msk [vmem:[#allocation2 + $0x4] sm:$0xf] %vm379_vm2, %v1383_v33  ;;  %v1384_v35 = vpack.c.bf16 %v364_v34, %v364_v34  ;;  %v2009_v36 = vpop.f32.mrb[4].mxu0 }
 0x161   :  { %v273_v37 = vpop.f32.mrb[5].mxu0 }
 0x162   :  { %449 = vst.msk [vmem:[#allocation2 + $0x8] sm:$0xf] %vm379_vm2, %v1384_v35  ;;  %v274_v38 = vadd.f32 %v273_v37, %v2000_v25  ;;  %v2013_v39 = vpop.f32.mrb[6].mxu0 }
 0x163   :  { %v277_v40 = vpop.f32.mrb[7].mxu0 }
 0x164   :  { %v365_v41 = vmax.f32 %v274_v38, 0.0  ;;  %v278_v42 = vadd.f32 %v277_v40, %v2000_v25 }
 0x166   :  { %v1385_v43 = vpack.c.bf16 %v365_v41, %v365_v41  ;;  %v366_v44 = vmax.f32 %v278_v42, 0.0 }
 0x167   :  { %v1613_v45 = vld [vmem:[#allocation2] sm:$0xff]  }
 0x168   :  { %450 = vst.msk [vmem:[#allocation2 + $0xc] sm:$0xf] %vm379_vm2, %v1385_v43  ;;  %v1386_v46 = vpack.c.bf16 %v366_v44, %v366_v44  ;;  %v2017_v47 = vpop.f32.mrb[8].mxu0  ;;  %1460 = vmatprep.mubr.msk.bf16.mxu1 %vm552_vm3, %v1613_v45 }
 0x169   :  { %v283_v48 = vpop.f32.mrb[9].mxu0 }
 0x16a   :  { %451 = vst.msk [vmem:[#allocation2 + $0x10] sm:$0xf] %vm379_vm2, %v1386_v46  ;;  %v284_v49 = vadd.f32 %v283_v48, %v2000_v25  ;;  %v2022_v50 = vpop.f32.mrb[10].mxu0 }
 0x16b   :  { %v287_v51 = vpop.f32.mrb[11].mxu0 }
 0x16c   :  { %v367_v52 = vmax.f32 %v284_v49, 0.0  ;;  %v288_v53 = vadd.f32 %v287_v51, %v2000_v25 }
 0x16e   :  { %v1387_v54 = vpack.c.bf16 %v367_v52, %v367_v52  ;;  %v368_v55 = vmax.f32 %v288_v53, 0.0 }
 0x16f   :  { %v1617_v57 = vld [vmem:[#allocation2 + $0x8] sm:$0xff]  }
 0x170   :  { %452 = vst.msk [vmem:[#allocation2 + $0x14] sm:$0xf] %vm379_vm2, %v1387_v54  ;;  %v1388_v58 = vpack.c.bf16 %v368_v55, %v368_v55  ;;  %v2026_v59 = vpop.f32.mrb[12].mxu0  ;;  %v1619_v60 = vld [vmem:[#allocation2 + $0x8] sm:$0xff]   ;;  %1461 = vmatmul.mubr.msk.bf16.vlgmr.msra.gmra.mrb[0].mxu1 %vm552_vm3, %v1617_v57 }
 0x171   :  { %v293_v61 = vpop.f32.mrb[13].mxu0  ;;  %1508 = vmatprep.mubr.msk.bf16.mxu0 %vm552_vm3, %v1619_v60  ;;  %1477 = vmatpush3.bf16.msra.mxu1 %v1625_v20 }
 0x172   :  { %453 = vst.msk [vmem:[#allocation2 + $0x18] sm:$0xf] %vm379_vm2, %v1388_v58  ;;  %v294_v62 = vadd.f32 %v293_v61, %v2000_v25  ;;  %v2031_v63 = vpop.f32.mrb[14].mxu0  ;;  %1478 = vmatprep.subr.bf16.mxu1 %v1628_v56 }
 0x173   :  { %v297_v0 = vpop.f32.mrb[15].mxu0 }
 0x174   :  { %v369_v2 = vmax.f32 %v294_v62, 0.0  ;;  %v298_v3 = vadd.f32 %v297_v0, %v2000_v25 }
 0x175   :  { %1479 = vmatpush3.bf16.msra.mxu1 %v1628_v56 }
 0x176   :  { %v1389_v4 = vpack.c.bf16 %v369_v2, %v369_v2  ;;  %v370_v5 = vmax.f32 %v298_v3, 0.0  ;;  %1480 = vmatprep.subr.bf16.mxu1 %v1631_v1 }
 0x177   :  { %v1621_v7 = vld [vmem:[#allocation2 + $0x10] sm:$0xff]  }
 0x178   :  { %454 = vst.msk [vmem:[#allocation2 + $0x1c] sm:$0xf] %vm379_vm2, %v1389_v4  ;;  %v1390_v8 = vpack.c.bf16 %v370_v5, %v370_v5  ;;  %v2036_v9 = vpop.f32.mrb[16].mxu0  ;;  %v1622_v10 = vld [vmem:[#allocation2 + $0x10] sm:$0xff]   ;;  %1464 = vmatprep.mubr.msk.bf16.mxu1 %vm552_vm3, %v1621_v7  ;;  %v1637_v7 = vld [vmem:[#allocation2 + $0x4] sm:$0xff]  }
 0x179   :  { %v303_v11 = vpop.f32.mrb[17].mxu0  ;;  %1509 = vmatmul.mubr.msk.bf16.vlgmr.msra.gmra.mrb[32].mxu0 %vm552_vm3, %v1622_v10  ;;  %1481 = vmatpush3.bf16.msra.mxu1 %v1631_v1  ;;  %v1640_v10 = vld [vmem:[#allocation2 + $0x14] sm:$0xff]  }
 0x17a   :  { %455 = vst.msk [vmem:[#allocation2 + $0x20] sm:$0xf] %vm379_vm2, %v1390_v8  ;;  %v304_v12 = vadd.f32 %v303_v11, %v2000_v25  ;;  %v2041_v13 = vpop.f32.mrb[18].mxu0  ;;  %1482 = vmatprep.subr.bf16.mxu1 %v1634_v6 }
 0x17b   :  { %v307_v14 = vpop.f32.mrb[19].mxu0 }
 0x17c   :  { %v371_v15 = vmax.f32 %v304_v12, 0.0  ;;  %v308_v16 = vadd.f32 %v307_v14, %v2000_v25 }
 0x17d   :  { %1483 = vmatpush3.bf16.msra.mxu1 %v1634_v6 }
 0x17e   :  { %v1391_v17 = vpack.c.bf16 %v371_v15, %v371_v15  ;;  %v372_v18 = vmax.f32 %v308_v16, 0.0 }
 0x17f   :  { %v1623_v19 = vld [vmem:[#allocation2 + $0x18] sm:$0xff]  }
 0x180   :  { %456 = vst.msk [vmem:[#allocation2 + $0x24] sm:$0xf] %vm379_vm2, %v1391_v17  ;;  %v1392_v20 = vpack.c.bf16 %v372_v18, %v372_v18  ;;  %v2046_v21 = vpop.f32.mrb[20].mxu0  ;;  %v1624_v23 = vld [vmem:[#allocation2 + $0x18] sm:$0xff]   ;;  %1465 = vmatmul.mubr.msk.bf16.gmra.mrb[4].mxu1 %vm552_vm3, %v1623_v19  ;;  %v1175_v18 = vld [vmem:[#allocation12 + $0x8] sm:$0xff] }
 0x181   :  { %v313_v27 = vpop.f32.mrb[21].mxu0  ;;  %1512 = vmatprep.mubr.msk.bf16.mxu0 %vm552_vm3, %v1624_v23  ;;  %v1641_v11 = vld [vmem:[#allocation2 + $0x1c] sm:$0xff]   ;;  %v1176_v23 = vld [vmem:[#allocation12 + $0x10] sm:$0xff] }
 0x182   :  { %457 = vst.msk [vmem:[#allocation2 + $0x28] sm:$0xf] %vm379_vm2, %v1392_v20  ;;  %v314_v28 = vadd.f32 %v313_v27, %v2000_v25  ;;  %v2051_v30 = vpop.f32.mrb[22].mxu0  ;;  %v1174_v17 = vld [vmem:[#allocation12] sm:$0xff]  ;;  %v1844_v20 = vmov 0.0|0.0   ;;  %v1177_v27 = vld [vmem:[#allocation12 + $0x18] sm:$0xff] }
 0x183   :  { %v317_v31 = vpop.f32.mrb[23].mxu0  ;;  %v1560_v19 = vpack.c.bf16 %v1175_v18, %v1174_v17  ;;  %1559 = vmatprep.subr.bf16.mxu1 %v1844_v20 }
 0x184   :  { %v373_v32 = vmax.f32 %v314_v28, 0.0  ;;  %v318_v33 = vadd.f32 %v317_v31, %v2000_v25  ;;  %v1563_v28 = vpack.c.bf16 %v1177_v27, %v1176_v23  ;;  %v1178_v31 = vld [vmem:[#allocation12 + $0x20] sm:$0xff] }
 0x186   :  { %v1393_v34 = vpack.c.bf16 %v373_v32, %v373_v32  ;;  %v374_v35 = vmax.f32 %v318_v33, 0.0  ;;  %v1179_v32 = vld [vmem:[#allocation12 + $0x28] sm:$0xff] }
 0x187   :  { %v1626_v37 = vld [vmem:[#allocation2 + $0x20] sm:$0xff]   ;;  %v1566_v33 = vpack.c.bf16 %v1179_v32, %v1178_v31 }
 0x188   :  { %458 = vst.msk [vmem:[#allocation2 + $0x2c] sm:$0xf] %vm379_vm2, %v1393_v34  ;;  %v1394_v38 = vpack.c.bf16 %v374_v35, %v374_v35  ;;  %v2056_v40 = vpop.f32.mrb[24].mxu0  ;;  %v1627_v41 = vld [vmem:[#allocation2 + $0x20] sm:$0xff]   ;;  %1468 = vmatprep.mubr.msk.bf16.mxu1 %vm552_vm3, %v1626_v37  ;;  %v1180_v34 = vld [vmem:[#allocation12 + $0x30] sm:$0xff]  ;;  %v1181_v35 = vld [vmem:[#allocation12 + $0x38] sm:$0xff] }
 0x189   :  { %v323_v42 = vpop.f32.mrb[25].mxu0  ;;  %1513 = vmatmul.mubr.msk.bf16.gmra.mrb[36].mxu0 %vm552_vm3, %v1627_v41  ;;  %v1642_v12 = vld [vmem:[#allocation2 + $0x24] sm:$0xff]   ;;  %v1569_v37 = vpack.c.bf16 %v1181_v35, %v1180_v34 }
 0x18a   :  { %459 = vst.msk [vmem:[#allocation2 + $0x30] sm:$0xf] %vm379_vm2, %v1394_v38  ;;  %v324_v43 = vadd.f32 %v323_v42, %v2000_v25  ;;  %v2061_v44 = vpop.f32.mrb[26].mxu0  ;;  %v1182_v38 = vld [vmem:[#allocation12 + $0x40] sm:$0xff]  ;;  %v1183_v41 = vld [vmem:[#allocation12 + $0x48] sm:$0xff] }
 0x18b   :  { %v327_v45 = vpop.f32.mrb[27].mxu0  ;;  %v1572_v42 = vpack.c.bf16 %v1183_v41, %v1182_v38 }
 0x18c   :  { %v375_v46 = vmax.f32 %v324_v43, 0.0  ;;  %v328_v48 = vadd.f32 %v327_v45, %v2000_v25  ;;  %v1184_v43 = vld [vmem:[#allocation12 + $0x50] sm:$0xff]  ;;  %v1185_v45 = vld [vmem:[#allocation12 + $0x58] sm:$0xff] }
 0x18e   :  { %v1395_v49 = vpack.c.bf16 %v375_v46, %v375_v46  ;;  %v376_v51 = vmax.f32 %v328_v48, 0.0  ;;  %v1575_v46 = vpack.c.bf16 %v1185_v45, %v1184_v43  ;;  %v1186_v48 = vld [vmem:[#allocation12 + $0x60] sm:$0xff] }
 0x18f   :  { %v1629_v52 = vld [vmem:[#allocation2 + $0x28] sm:$0xff]  }
 0x190   :  { %460 = vst.msk [vmem:[#allocation2 + $0x34] sm:$0xf] %vm379_vm2, %v1395_v49  ;;  %v1396_v53 = vpack.c.bf16 %v376_v51, %v376_v51  ;;  %v2066_v54 = vpop.f32.mrb[28].mxu0  ;;  %v1630_v55 = vld [vmem:[#allocation2 + $0x28] sm:$0xff]   ;;  %1469 = vmatmul.mubr.msk.bf16.gmra.mrb[8].mxu1 %vm552_vm3, %v1629_v52 }
 0x191   :  { %v333_v56 = vpop.f32.mrb[29].mxu0  ;;  %1516 = vmatprep.mubr.msk.bf16.mxu0 %vm552_vm3, %v1630_v55  ;;  %v1643_v14 = vld [vmem:[#allocation2 + $0x2c] sm:$0xff]   ;;  %v1187_v49 = vld [vmem:[#allocation12 + $0x68] sm:$0xff] }
 0x192   :  { %461 = vst.msk [vmem:[#allocation2 + $0x38] sm:$0xf] %vm379_vm2, %v1396_v53  ;;  %v334_v57 = vadd.f32 %v333_v56, %v2000_v25  ;;  %v2071_v58 = vpop.f32.mrb[30].mxu0  ;;  %v1578_v51 = vpack.c.bf16 %v1187_v49, %v1186_v48  ;;  %v1188_v52 = vld [vmem:[#allocation12 + $0x70] sm:$0xff]  ;;  %v1189_v53 = vld [vmem:[#allocation12 + $0x78] sm:$0xff]  ;;  %v1846_v56 = vmov 0.0  }
 0x193   :  { %v337_v60 = vpop.f32.mrb[31].mxu0  ;;  %v1581_v55 = vpack.c.bf16 %v1189_v53, %v1188_v52 }
 0x194   :  { %v377_v61 = vmax.f32 %v334_v57, 0.0  ;;  %v338_v62 = vadd.f32 %v337_v60, %v2000_v25  ;;  %v1639_v25 = vld [vmem:[#allocation2 + $0xc] sm:$0xff]   ;;  %v139_v57 = vsub.s32 0, %v1994_v22 }
 0x196   :  { %v1397_v0 = vpack.c.bf16 %v377_v61, %v377_v61  ;;  %v378_v1 = vmax.f32 %v338_v62, 0.0  ;;  %v2092_v60 = vrot.slane %v1997_v24, %v139_v57 }
 0x197   :  { %v1632_v2 = vld [vmem:[#allocation2 + $0x30] sm:$0xff]  }
 0x198   :  { %462 = vst.msk [vmem:[#allocation2 + $0x3c] sm:$0xf] %vm379_vm2, %v1397_v0  ;;  %v1398_v3 = vpack.c.bf16 %v378_v1, %v378_v1  ;;  %v1633_v4 = vld [vmem:[#allocation2 + $0x30] sm:$0xff]   ;;  %1472 = vmatprep.mubr.msk.bf16.mxu1 %vm552_vm3, %v1632_v2  ;;  %v272_v61 = vadd.f32 %v2009_v36, %v2092_v60  ;;  %v262_v62 = vadd.f32 %v2002_v26, %v2092_v60  ;;  %v2100_v1 = vld [vmem:[#allocation11] ss:$0 sm:$0xff] }
 0x199   :  { %1517 = vmatmul.mubr.msk.bf16.gmra.mrb[40].mxu0 %vm552_vm3, %v1633_v4  ;;  %v1644_v15 = vld [vmem:[#allocation2 + $0x34] sm:$0xff]   ;;  %v276_v0 = vadd.f32 %v2013_v39, %v2092_v60  ;;  %v266_v2 = vadd.f32 %v2005_v29, %v2092_v60  ;;  %v286_v17 = vadd.f32 %v2022_v50, %v2092_v60  ;;  %v312_v35 = vadd.f32 %v2046_v21, %v2092_v60 }
 0x19a   :  { %463 = vst.msk [vmem:[#allocation2 + $0x40] sm:$0xf] %vm379_vm2, %v1398_v3  ;;  %v349_v3 = vadd.f32 %v2100_v1, %v272_v61  ;;  %v347_v24 = vadd.f32 %v2100_v1, %v262_v62  ;;  %v302_v38 = vadd.f32 %v2036_v9, %v2092_v60  ;;  %v306_v43 = vadd.f32 %v2041_v13, %v2092_v60 }
 0x19b   :  { %v350_v36 = vadd.f32 %v2100_v1, %v276_v0  ;;  %v348_v39 = vadd.f32 %v2100_v1, %v266_v2  ;;  %v352_v31 = vadd.f32 %v2100_v1, %v286_v17  ;;  %v357_v45 = vadd.f32 %v2100_v1, %v312_v35 }
 0x19c   :  { %v355_v48 = vadd.f32 %v2100_v1, %v302_v38  ;;  %v356_v53 = vadd.f32 %v2100_v1, %v306_v43  ;;  %v332_v61 = vadd.f32 %v2066_v54, %v2092_v60  ;;  %v322_v0 = vadd.f32 %v2056_v40, %v2092_v60 }
 0x19f   :  { %v1635_v5 = vld [vmem:[#allocation2 + $0x38] sm:$0xff]  }
 0x1a0   :  { %v1636_v6 = vld [vmem:[#allocation2 + $0x38] sm:$0xff]   ;;  %1473 = vmatmul.mubr.msk.bf16.gmra.mrb[12].mxu1 %vm552_vm3, %v1635_v5 }
 0x1a1   :  { %v1638_v8 = vld [vmem:[#allocation2 + $0x40] sm:$0xff]   ;;  %1520 = vmatprep.mubr.msk.bf16.mxu0 %vm552_vm3, %v1636_v6  ;;  %1484 = vmatprep.mubr.msk.bf16.mxu1 %vm552_vm3, %v1637_v7 }
 0x1a2   :  { %1521 = vmatmul.mubr.msk.bf16.gmra.mrb[44].mxu0 %vm552_vm3, %v1638_v8  ;;  %v1645_v16 = vld [vmem:[#allocation2 + $0x3c] sm:$0xff]  }
 0x1a8   :  { %1485 = vmatmul.mubr.msk.bf16.vlgmr.msra.gmra.mrb[16].mxu1 %vm552_vm3, %v1639_v25 }
 0x1a9   :  { %1488 = vmatprep.mubr.msk.bf16.mxu1 %vm552_vm3, %v1640_v10  ;;  %1561 = vmatpush3.bf16.msra.mxu1 %v1560_v19 }
 0x1aa   :  { %1562 = vmatprep.subr.bf16.mxu1 %v1844_v20 }
 0x1ad   :  { %1564 = vmatpush3.bf16.msra.mxu1 %v1563_v28 }
 0x1ae   :  { %1565 = vmatprep.subr.bf16.mxu1 %v1844_v20 }
 0x1b0   :  { %1489 = vmatmul.mubr.msk.bf16.gmra.mrb[20].mxu1 %vm552_vm3, %v1641_v11  ;;  %v292_v11 = vadd.f32 %v2026_v59, %v2092_v60 }
 0x1b1   :  { %1492 = vmatprep.mubr.msk.bf16.mxu1 %vm552_vm3, %v1642_v12  ;;  %1567 = vmatpush3.bf16.msra.mxu1 %v1566_v33 }
 0x1b2   :  { %1568 = vmatprep.subr.bf16.mxu1 %v1844_v20  ;;  %v353_v18 = vadd.f32 %v2100_v1, %v292_v11 }
 0x1b5   :  { %1570 = vmatpush3.bf16.msra.mxu1 %v1569_v37 }
 0x1b6   :  { %1571 = vmatprep.subr.bf16.mxu1 %v1844_v20 }
 0x1b8   :  { %1493 = vmatmul.mubr.msk.bf16.gmra.mrb[24].mxu1 %vm552_vm3, %v1643_v14  ;;  %v282_v14 = vadd.f32 %v2017_v47, %v2092_v60 }
 0x1b9   :  { %1496 = vmatprep.mubr.msk.bf16.mxu1 %vm552_vm3, %v1644_v15  ;;  %1573 = vmatpush3.bf16.msra.mxu1 %v1572_v42  ;;  %v316_v42 = vadd.f32 %v2051_v30, %v2092_v60 }
 0x1ba   :  { %1574 = vmatprep.subr.bf16.mxu1 %v1844_v20 }
 0x1bd   :  { %1576 = vmatpush3.bf16.msra.mxu1 %v1575_v46 }
 0x1be   :  { %1577 = vmatprep.subr.bf16.mxu1 %v1844_v20 }
 0x1c0   :  { %1497 = vmatmul.mubr.msk.bf16.gmra.mrb[28].mxu1 %vm552_vm3, %v1645_v16  ;;  %v296_v16 = vadd.f32 %v2031_v63, %v2092_v60 }
 0x1c1   :  { %1579 = vmatpush3.bf16.msra.mxu1 %v1578_v51  ;;  %1556 = vmatprep.mubr.msk.f32.mxu1 %vm1845_vm4, %v1846_v56  ;;  %v358_v51 = vadd.f32 %v2100_v1, %v316_v42 }
 0x1c2   :  { %1580 = vmatprep.subr.bf16.mxu1 %v1844_v20  ;;  %v351_v20 = vadd.f32 %v2100_v1, %v282_v14  ;;  %v354_v27 = vadd.f32 %v2100_v1, %v296_v16 }
 0x1c5   :  { %1582 = vmatpush3.bf16.msra.mxu1 %v1581_v55 }
 0x243   :  { %v1462_v22 = vpop.f32.mrb[0].mxu1 }
 0x244   :  { %v2106_v4 = vadd.f32 %v1462_v22, %v349_v3  ;;  %v611_v5 = vpop.f32.mrb[1].mxu1  ;;  %v336_v3 = vadd.f32 %v2071_v58, %v2092_v60  ;;  %v326_v22 = vadd.f32 %v2061_v44, %v2092_v60 }
 0x245   :  { %v2109_v6 = vadd.f32 %v611_v5, %v347_v24  ;;  %v1463_v26 = vpop.f32.mrb[2].mxu1  ;;  %v361_v24 = vadd.f32 %v2100_v1, %v332_v61 }
 0x246   :  { %v2112_v7 = vadd.f32 %v1463_v26, %v350_v36  ;;  %v614_v8 = vpop.f32.mrb[3].mxu1  ;;  %v359_v36 = vadd.f32 %v2100_v1, %v322_v0  ;;  %v360_v58 = vadd.f32 %v2100_v1, %v326_v22 }
 0x247   :  { %v2114_v25 = vadd.f32 %v614_v8, %v348_v39  ;;  %v362_v39 = vadd.f32 %v2100_v1, %v336_v3 }
 0x24c   :  { %v2116_v29 = vpop.f32.mrb[32].mxu0 }
 0x24d   :  { %v2118_v10 = vpop.f32.mrb[33].mxu0 }
 0x24e   :  { %v2122_v12 = vpop.f32.mrb[34].mxu0 }
 0x24f   :  { %v2126_v15 = vpop.f32.mrb[35].mxu0 }
 0x253   :  { %v1466_v19 = vpop.f32.mrb[4].mxu1 }
 0x254   :  { %v2134_v23 = vadd.f32 %v1466_v19, %v353_v18  ;;  %v627_v59 = vpop.f32.mrb[5].mxu1 }
 0x255   :  { %v2137_v28 = vadd.f32 %v627_v59, %v351_v20  ;;  %v1467_v47 = vpop.f32.mrb[6].mxu1 }
 0x256   :  { %v2140_v32 = vadd.f32 %v1467_v47, %v354_v27  ;;  %v630_v63 = vpop.f32.mrb[7].mxu1 }
 0x257   :  { %v2142_v33 = vadd.f32 %v630_v63, %v352_v31 }
 0x25c   :  { %v2144_v50 = vpop.f32.mrb[36].mxu0 }
 0x25d   :  { %v2146_v34 = vpop.f32.mrb[37].mxu0 }
 0x25e   :  { %v2150_v37 = vpop.f32.mrb[38].mxu0 }
 0x25f   :  { %v2154_v41 = vpop.f32.mrb[39].mxu0 }
 0x263   :  { %v1470_v46 = vpop.f32.mrb[8].mxu1 }
 0x264   :  { %v2162_v49 = vadd.f32 %v1470_v46, %v357_v45  ;;  %v643_v21 = vpop.f32.mrb[9].mxu1 }
 0x265   :  { %v2165_v52 = vadd.f32 %v643_v21, %v355_v48  ;;  %v1471_v9 = vpop.f32.mrb[10].mxu1 }
 0x266   :  { %v2168_v55 = vadd.f32 %v1471_v9, %v358_v51  ;;  %v646_v30 = vpop.f32.mrb[11].mxu1 }
 0x267   :  { %v2170_v56 = vadd.f32 %v646_v30, %v356_v53 }
 0x26c   :  { %v2172_v13 = vpop.f32.mrb[40].mxu0 }
 0x26d   :  { %v2174_v57 = vpop.f32.mrb[41].mxu0 }
 0x26e   :  { %v2178_v62 = vpop.f32.mrb[42].mxu0 }
 0x26f   :  { %v2182_v2 = vpop.f32.mrb[43].mxu0 }
 0x273   :  { %v1474_v5 = vpop.f32.mrb[12].mxu1 }
 0x274   :  { %v2190_v26 = vadd.f32 %v1474_v5, %v361_v24  ;;  %v659_v54 = vpop.f32.mrb[13].mxu1 }
 0x275   :  { %v2193_v8 = vadd.f32 %v659_v54, %v359_v36  ;;  %v1475_v40 = vpop.f32.mrb[14].mxu1  ;;  %v2195_v11 = vpop.f32.mrb[44].mxu0 }
 0x276   :  { %v2198_v14 = vadd.f32 %v1475_v40, %v362_v39  ;;  %v662_v44 = vpop.f32.mrb[15].mxu1  ;;  %v2200_v60 = vpop.f32.mrb[45].mxu0 }
 0x277   :  { %v2202_v16 = vadd.f32 %v662_v44, %v360_v58  ;;  %v2204_v17 = vpop.f32.mrb[46].mxu0 }
 0x278   :  { %v2206_v18 = vpop.f32.mrb[47].mxu0 }
 0x27b   :  { %v1486_v19 = vpop.f32.mrb[16].mxu1 }
 0x27c   :  { %v902_v20 = vadd.f32 %v1486_v19, %v2106_v4  ;;  %v837_v59 = vpop.f32.mrb[17].mxu1 }
 0x27d   :  { %v900_v27 = vadd.f32 %v837_v59, %v2109_v6  ;;  %v1487_v47 = vpop.f32.mrb[18].mxu1 }
 0x27e   :  { %v1129_v1 = vadd.f32 %v2116_v29, %v902_v20  ;;  %v903_v31 = vadd.f32 %v1487_v47, %v2112_v7  ;;  %v840_v63 = vpop.f32.mrb[19].mxu1 }
 0x27f   :  { %v1127_v35 = vadd.f32 %v2118_v10, %v900_v27  ;;  %v901_v38 = vadd.f32 %v840_v63, %v2114_v25 }
 0x280   :  { %v1130_v42 = vadd.f32 %v2122_v12, %v903_v31  ;;  %v1145_v21 = vmax.f32 %v1129_v1, 0.0 }
 0x281   :  { %v1128_v43 = vadd.f32 %v2126_v15, %v901_v38  ;;  %v1143_v45 = vmax.f32 %v1127_v35, 0.0 }
 0x282   :  { %v1146_v53 = vmax.f32 %v1130_v42, 0.0 }
 0x283   :  { %v1144_v46 = vmax.f32 %v1128_v43, 0.0  ;;  %v1490_v4 = vpop.f32.mrb[20].mxu1 }
 0x284   :  { %v906_v48 = vadd.f32 %v1490_v4, %v2134_v23  ;;  %v853_v6 = vpop.f32.mrb[21].mxu1 }
 0x285   :  { %v1159_v51 = vadd.f32 %v1144_v46, %v1143_v45  ;;  %v904_v29 = vadd.f32 %v853_v6, %v2137_v28  ;;  %v1491_v7 = vpop.f32.mrb[22].mxu1 }
 0x286   :  { %v1133_v9 = vadd.f32 %v2144_v50, %v906_v48  ;;  %v907_v10 = vadd.f32 %v1491_v7, %v2140_v32  ;;  %v856_v25 = vpop.f32.mrb[23].mxu1 }
 0x287   :  { %v1160_v12 = vadd.f32 %v1159_v51, %v1145_v21  ;;  %v1131_v15 = vadd.f32 %v2146_v34, %v904_v29  ;;  %v905_v30 = vadd.f32 %v856_v25, %v2142_v33  ;;  %v1382_v29 = vld [vmem:[#allocation14] ss:$0 sm:$0xff] }
 0x288   :  { %v1134_v61 = vadd.f32 %v2150_v37, %v907_v10  ;;  %v1149_v32 = vmax.f32 %v1133_v9, 0.0 }
 0x289   :  { %v1147_v23 = vmax.f32 %v1131_v15, 0.0  ;;  %v1161_v0 = vadd.f32 %v1160_v12, %v1146_v53  ;;  %v1132_v3 = vadd.f32 %v2154_v41, %v905_v30 }
 0x28a   :  { %v1150_v40 = vmax.f32 %v1134_v61, 0.0 }
 0x28b   :  { %v1162_v22 = vadd.f32 %v1161_v0, %v1147_v23  ;;  %v1148_v28 = vmax.f32 %v1132_v3, 0.0  ;;  %v1494_v24 = vpop.f32.mrb[24].mxu1 }
 0x28c   :  { %v910_v50 = vadd.f32 %v1494_v24, %v2162_v49  ;;  %v869_v5 = vpop.f32.mrb[25].mxu1 }
 0x28d   :  { %v1163_v36 = vadd.f32 %v1162_v22, %v1148_v28  ;;  %v908_v54 = vadd.f32 %v869_v5, %v2165_v52  ;;  %v1495_v39 = vpop.f32.mrb[26].mxu1 }
 0x28e   :  { %v1137_v34 = vadd.f32 %v2172_v13, %v910_v50  ;;  %v911_v33 = vadd.f32 %v1495_v39, %v2168_v55  ;;  %v872_v37 = vpop.f32.mrb[27].mxu1 }
 0x28f   :  { %v1164_v58 = vadd.f32 %v1163_v36, %v1149_v32  ;;  %v1135_v41 = vadd.f32 %v2174_v57, %v908_v54  ;;  %v909_v44 = vadd.f32 %v872_v37, %v2170_v56 }
 0x290   :  { %v1138_v19 = vadd.f32 %v2178_v62, %v911_v33  ;;  %v1153_v55 = vmax.f32 %v1137_v34, 0.0 }
 0x291   :  { %v1151_v49 = vmax.f32 %v1135_v41, 0.0  ;;  %v1165_v20 = vadd.f32 %v1164_v58, %v1150_v40  ;;  %v1136_v59 = vadd.f32 %v2182_v2, %v909_v44 }
 0x292   :  { %v1154_v38 = vmax.f32 %v1138_v19, 0.0 }
 0x293   :  { %v1166_v27 = vadd.f32 %v1165_v20, %v1151_v49  ;;  %v1152_v52 = vmax.f32 %v1136_v59, 0.0  ;;  %v1498_v47 = vpop.f32.mrb[28].mxu1 }
 0x294   :  { %v914_v13 = vadd.f32 %v1498_v47, %v2190_v26  ;;  %v885_v1 = vpop.f32.mrb[29].mxu1 }
 0x295   :  { %v1167_v31 = vadd.f32 %v1166_v27, %v1152_v52  ;;  %v912_v63 = vadd.f32 %v885_v1, %v2193_v8  ;;  %v1499_v35 = vpop.f32.mrb[30].mxu1 }
 0x296   :  { %v1141_v57 = vadd.f32 %v2195_v11, %v914_v13  ;;  %v915_v56 = vadd.f32 %v1499_v35, %v2198_v14  ;;  %v888_v62 = vpop.f32.mrb[31].mxu1 }
 0x297   :  { %v1168_v42 = vadd.f32 %v1167_v31, %v1153_v55  ;;  %v1139_v2 = vadd.f32 %v2200_v60, %v912_v63  ;;  %v913_v43 = vadd.f32 %v888_v62, %v2202_v16 }
 0x298   :  { %v1142_v45 = vadd.f32 %v2204_v17, %v915_v56  ;;  %v1157_v6 = vmax.f32 %v1141_v57, 0.0 }
 0x299   :  { %v1155_v26 = vmax.f32 %v1139_v2, 0.0  ;;  %v1169_v46 = vadd.f32 %v1168_v42, %v1154_v38  ;;  %v1140_v4 = vadd.f32 %v2206_v18, %v913_v43 }
 0x29a   :  { %v1158_v11 = vmax.f32 %v1142_v45, 0.0 }
 0x29b   :  { %v1170_v48 = vadd.f32 %v1169_v46, %v1155_v26  ;;  %v1156_v8 = vmax.f32 %v1140_v4, 0.0 }
 0x29d   :  { %v1171_v21 = vadd.f32 %v1170_v48, %v1156_v8 }
 0x29f   :  { %v1172_v51 = vadd.f32 %v1171_v21, %v1157_v6 }
 0x2a1   :  { %v1173_v14 = vadd.f32 %v1172_v51, %v1158_v11 }
 0x2a3   :  { %1557 = vmatmul.mubr.f32.vlgmr.msra.gmra.mrb[32].mxu1 %v1173_v14 }
 0x376   :  { %v1263_v60 = vpop.f32.mrb[32].mxu1 }
 0x377   :  { %v1264_v7 = vadd.f32 %v1382_v29, %v1263_v60  ;;  %v1558_v16 = vpop.f32.mrb[33].mxu1 }
 0x379   :  { %1267 = vst [vmem:[#allocation15] sm:$0xff] %v1264_v7 }
 0x37a   :  { %1811 = shalt.err (!%p1808_p4)
}
 0x37b   :  { %s1812_s3 = scalar_lea.hbm %s2259_s7, 128 }
 0x37c   :  { %p1813_p5 = scmp.ne.s32.totalorder %s2259_s7, %s1812_s3  ;;  %p1816_p6 = scmp.lt.u32.totalorder %s1812_s3, %s2259_s7 }
 0x37e   :  { %p1818_p7 = pnand %p1816_p6, %p1813_p5 }
 0x380   :  { %1821 = shalt.err (!%p1818_p7)
}
 0x381   :  { %1277 = dma.vmem_to_hbm [thread:$0]  %s1275_s17, 128, %s2259_s7, [#allocation5]  }
 0x382   :  { %1830 = dma.done.wait [#allocation5], 128  }
 0x383   :  { %1831 = vsyncadd [#allocation5], 4294967168 }
 0x384   :  { %1281 = vsyncpa [#allocation4], 1 }
 0x385   :  { %1282 = vsyncpa [#allocation7], 1 }
 0x386   :  { %1283 = vsyncpa [#allocation10], 1 }
 0x387   :  { %1284 = vsyncpa [#allocation13], 1 }
 0x388   :  { %1285 = vsyncpa [#allocation5], 1 }

</bundles_post_ra>
